<compile_context>
chip_gen: v6e
topology: v6e:2x2x1
jax: 0.10.0
libtpu: 0.0.40
codegen_flags: <defaults>
</compile_context>

<pallas_src>
import functools

import numpy as np
import jax
import jax.numpy as jnp
from jax import lax
from jax.experimental import pallas as pl
from jax.experimental.pallas import tpu as pltpu

# small, module-consistent shapes
BATCH = 2
D_MODEL = 32
SEQ_LEN = 64
LARGE_KS = 9
SMALL_KS = 3
BN_EPS = 1e-5

_SQRT_HALF = np.float32(1.0 / np.sqrt(2.0))


def _gelu(x):
    # exact (erf-based) GELU == torch.nn.GELU() default
    return 0.5 * x * (1.0 + lax.erf(x * _SQRT_HALF))


def _conv_encoder_kernel(xt_ref, p_ref, o_ref, *, ks, pad, batch, seq_len):
    """Whole layer in one gridless invocation.

    xt_ref: (ks, C, B*L)   im2col taps; tap `pad` is exactly the original (unpadded) input
    p_ref : (ks+4, C, 1)   packed per-channel params:
                             rows [0:ks]   merged depthwise weights (one row per tap)
                             row  ks       merged depthwise bias
                             row  ks+1     a1 * bn_scale
                             row  ks+2     bn_scale
                             row  ks+3     bn_shift
    o_ref : (B, C, L)
    """
    # Depthwise conv: pure VPU FMA chain over aligned full-width tap tiles.
    acc = p_ref[0] * xt_ref[0]                      # (C,1) * (C, B*L) -> (C, B*L)
    for k in range(1, ks):                          # unrolled, ks = 9 taps
        acc = acc + p_ref[k] * xt_ref[k]
    acc = acc + p_ref[ks]                           # merged depthwise bias

    src = xt_ref[pad]                               # original input tile, (C, B*L)
    # BN(x + a1*gelu(conv))  ==  x*scale + (a1*scale)*gelu(conv) + shift   (eval-mode BN)
    res = src * p_ref[ks + 2] + p_ref[ks + 1] * _gelu(acc) + p_ref[ks + 3]

    # Emit the consumer's (B, C, L) layout directly: one per-batch store.
    for b in range(batch):
        o_ref[b] = res[:, b * seq_len:(b + 1) * seq_len]


def _merged_dw_params(params):
    """Mirror of _get_merged_param(): large kernel + zero-padded small kernel."""
    large_ks = params["dw_w_large"].shape[-1]
    small_ks = params["dw_w_small"].shape[-1]
    left = (large_ks - small_ks) // 2
    right = large_ks - small_ks - left
    w = params["dw_w_large"] + jnp.pad(params["dw_w_small"], ((0, 0), (left, right)))
    b = params["dw_b_large"] + params["dw_b_small"]
    return w, b


def conv_encoder_layer(x, params):
    B, C, L = x.shape
    w_merged, b_merged = _merged_dw_params(params)
    ks = w_merged.shape[-1]
    pad = ks // 2

    # im2col slab: x_taps[k, c, b*L + t] = x_padded[b, c, t + k]
    # Batch folded into the lane axis -> (C, B*L) = (32, 128): full, unmasked lane tiles.
    xpad = jnp.pad(x.astype(jnp.float32), ((0, 0), (0, 0), (pad, pad)))
    x_taps = jnp.stack([xpad[:, :, k:k + L] for k in range(ks)], axis=0)   # (ks, B, C, L)
    x_taps = jnp.transpose(x_taps, (0, 2, 1, 3)).reshape(ks, C, B * L)     # (ks, C, B*L)

    # Fold eval-mode BatchNorm (and the residual scale a1) into per-channel affine terms.
    scale = params["bn1_gamma"] * lax.rsqrt(params["bn1_var"] + BN_EPS)
    shift = params["bn1_beta"] - params["bn1_mean"] * scale
    a1_scale = params["a1"] * scale

    col = lambda v: jnp.asarray(v, jnp.float32).reshape(1, C, 1)
    p_slab = jnp.concatenate(
        [jnp.transpose(w_merged.astype(jnp.float32))[:, :, None],   # (ks, C, 1), lane-0 columns
         col(b_merged), col(a1_scale), col(scale), col(shift)],
        axis=0)                                                      # (ks+4, C, 1)

    kern = functools.partial(
        _conv_encoder_kernel, ks=ks, pad=pad, batch=B, seq_len=L)
    vmem = pl.BlockSpec(memory_space=pltpu.MemorySpace.VMEM)

    return pl.pallas_call(
        kern,
        out_shape=jax.ShapeDtypeStruct((B, C, L), jnp.float32),
        in_specs=[vmem, vmem],
        out_specs=vmem,
        compiler_params=pltpu.CompilerParams(
            # Let XLA fuse the pad/slice/stack/transpose (im2col) and the tiny param
            # packing directly into the pallas_call inputs.
            allow_input_fusion=[True, True]),
    )(x_taps, p_slab)


def reference(x, params):
    """Pure-JAX reference of the returned value of ConvEncoderLayer.forward (eval)."""
    w, b = _merged_dw_params(params)
    ks = w.shape[-1]
    pad = ks // 2
    L = x.shape[-1]
    xpad = jnp.pad(x, ((0, 0), (0, 0), (pad, pad)))
    conv = sum(w[None, :, k:k + 1] * xpad[:, :, k:k + L] for k in range(ks))
    conv = conv + b[None, :, None]
    res1 = x + params["a1"] * _gelu(conv)
    inv = lax.rsqrt(params["bn1_var"][None, :, None] + BN_EPS)
    return (res1 - params["bn1_mean"][None, :, None]) * inv \
        * params["bn1_gamma"][None, :, None] + params["bn1_beta"][None, :, None]


def init_params(key):
    ks = jax.random.split(key, 8)
    f32 = jnp.float32
    return {
        "dw_w_large": 0.2 * jax.random.normal(ks[0], (D_MODEL, LARGE_KS), f32),
        "dw_b_large": 0.1 * jax.random.normal(ks[1], (D_MODEL,), f32),
        "dw_w_small": 0.2 * jax.random.normal(ks[2], (D_MODEL, SMALL_KS), f32),
        "dw_b_small": 0.1 * jax.random.normal(ks[3], (D_MODEL,), f32),
        "a1": jnp.asarray(0.25, f32),
        "bn1_gamma": 1.0 + 0.1 * jax.random.normal(ks[4], (D_MODEL,), f32),
        "bn1_beta": 0.1 * jax.random.normal(ks[5], (D_MODEL,), f32),
        "bn1_mean": 0.1 * jax.random.normal(ks[6], (D_MODEL,), f32),
        "bn1_var": 1.0 + jnp.abs(0.2 * jax.random.normal(ks[7], (D_MODEL,), f32)),
    }
    # TODO(synk): nn.Dropout training-mode RNG masking not implemented (eval -> identity).
    # TODO(synk): the FF / norm_ffn branch of forward() is dead code (result discarded,
    # no eval-mode side effects), so it is intentionally not computed.


if __name__ == "__main__":
    key = jax.random.PRNGKey(0)
    kx, kp = jax.random.split(key)
    src = jax.random.normal(kx, (BATCH, D_MODEL, SEQ_LEN), jnp.float32)
    params = init_params(kp)

    out = jax.jit(conv_encoder_layer)(src, params)
    out = jax.block_until_ready(out)

    ref = reference(src, params)
    assert out.shape == (BATCH, D_MODEL, SEQ_LEN) and out.dtype == jnp.float32
    np.testing.assert_allclose(np.asarray(out), np.asarray(ref), rtol=1e-4, atol=1e-4)
    print("KERNEL_OK")
</pallas_src>

<mosaic_0001>
module attributes {stable_mosaic.version = 11 : i64} {
  func.func @_conv_encoder_kernel(%arg0: memref<9x32x128xf32, #tpu.memory_space<vmem>>, %arg1: memref<13x32x1xf32, #tpu.memory_space<vmem>>, %arg2: memref<2x32x64xf32, #tpu.memory_space<vmem>>) attributes {dimension_semantics = [], scalar_prefetch = 0 : i64, scratch_operands = 0 : i64, tpu.core_type = #tpu.core_type<tc>} {
    %c0 = arith.constant 0 : index
    %c0_0 = arith.constant 0 : index
    %c0_1 = arith.constant 0 : index
    %0 = vector.load %arg1[%c0, %c0_0, %c0_1] : memref<13x32x1xf32, #tpu.memory_space<vmem>>, vector<1x32x1xf32>
    %1 = vector.shape_cast %0 : vector<1x32x1xf32> to vector<32x1xf32>
    %c0_2 = arith.constant 0 : index
    %c0_3 = arith.constant 0 : index
    %c0_4 = arith.constant 0 : index
    %2 = vector.load %arg0[%c0_2, %c0_3, %c0_4] : memref<9x32x128xf32, #tpu.memory_space<vmem>>, vector<1x32x128xf32>
    %3 = vector.shape_cast %2 : vector<1x32x128xf32> to vector<32x128xf32>
    %4 = vector.broadcast %1 : vector<32x1xf32> to vector<32x128xf32>
    %5 = arith.mulf %4, %3 : vector<32x128xf32>
    %c1 = arith.constant 1 : index
    %c0_5 = arith.constant 0 : index
    %c0_6 = arith.constant 0 : index
    %6 = vector.load %arg1[%c1, %c0_5, %c0_6] : memref<13x32x1xf32, #tpu.memory_space<vmem>>, vector<1x32x1xf32>
    %7 = vector.shape_cast %6 : vector<1x32x1xf32> to vector<32x1xf32>
    %c1_7 = arith.constant 1 : index
    %c0_8 = arith.constant 0 : index
    %c0_9 = arith.constant 0 : index
    %8 = vector.load %arg0[%c1_7, %c0_8, %c0_9] : memref<9x32x128xf32, #tpu.memory_space<vmem>>, vector<1x32x128xf32>
    %9 = vector.shape_cast %8 : vector<1x32x128xf32> to vector<32x128xf32>
    %10 = vector.broadcast %7 : vector<32x1xf32> to vector<32x128xf32>
    %11 = arith.mulf %10, %9 : vector<32x128xf32>
    %12 = arith.addf %5, %11 : vector<32x128xf32>
    %c2 = arith.constant 2 : index
    %c0_10 = arith.constant 0 : index
    %c0_11 = arith.constant 0 : index
    %13 = vector.load %arg1[%c2, %c0_10, %c0_11] : memref<13x32x1xf32, #tpu.memory_space<vmem>>, vector<1x32x1xf32>
    %14 = vector.shape_cast %13 : vector<1x32x1xf32> to vector<32x1xf32>
    %c2_12 = arith.constant 2 : index
    %c0_13 = arith.constant 0 : index
    %c0_14 = arith.constant 0 : index
    %15 = vector.load %arg0[%c2_12, %c0_13, %c0_14] : memref<9x32x128xf32, #tpu.memory_space<vmem>>, vector<1x32x128xf32>
    %16 = vector.shape_cast %15 : vector<1x32x128xf32> to vector<32x128xf32>
    %17 = vector.broadcast %14 : vector<32x1xf32> to vector<32x128xf32>
    %18 = arith.mulf %17, %16 : vector<32x128xf32>
    %19 = arith.addf %12, %18 : vector<32x128xf32>
    %c3 = arith.constant 3 : index
    %c0_15 = arith.constant 0 : index
    %c0_16 = arith.constant 0 : index
    %20 = vector.load %arg1[%c3, %c0_15, %c0_16] : memref<13x32x1xf32, #tpu.memory_space<vmem>>, vector<1x32x1xf32>
    %21 = vector.shape_cast %20 : vector<1x32x1xf32> to vector<32x1xf32>
    %c3_17 = arith.constant 3 : index
    %c0_18 = arith.constant 0 : index
    %c0_19 = arith.constant 0 : index
    %22 = vector.load %arg0[%c3_17, %c0_18, %c0_19] : memref<9x32x128xf32, #tpu.memory_space<vmem>>, vector<1x32x128xf32>
    %23 = vector.shape_cast %22 : vector<1x32x128xf32> to vector<32x128xf32>
    %24 = vector.broadcast %21 : vector<32x1xf32> to vector<32x128xf32>
    %25 = arith.mulf %24, %23 : vector<32x128xf32>
    %26 = arith.addf %19, %25 : vector<32x128xf32>
    %c4 = arith.constant 4 : index
    %c0_20 = arith.constant 0 : index
    %c0_21 = arith.constant 0 : index
    %27 = vector.load %arg1[%c4, %c0_20, %c0_21] : memref<13x32x1xf32, #tpu.memory_space<vmem>>, vector<1x32x1xf32>
    %28 = vector.shape_cast %27 : vector<1x32x1xf32> to vector<32x1xf32>
    %c4_22 = arith.constant 4 : index
    %c0_23 = arith.constant 0 : index
    %c0_24 = arith.constant 0 : index
    %29 = vector.load %arg0[%c4_22, %c0_23, %c0_24] : memref<9x32x128xf32, #tpu.memory_space<vmem>>, vector<1x32x128xf32>
    %30 = vector.shape_cast %29 : vector<1x32x128xf32> to vector<32x128xf32>
    %31 = vector.broadcast %28 : vector<32x1xf32> to vector<32x128xf32>
    %32 = arith.mulf %31, %30 : vector<32x128xf32>
    %33 = arith.addf %26, %32 : vector<32x128xf32>
    %c5 = arith.constant 5 : index
    %c0_25 = arith.constant 0 : index
    %c0_26 = arith.constant 0 : index
    %34 = vector.load %arg1[%c5, %c0_25, %c0_26] : memref<13x32x1xf32, #tpu.memory_space<vmem>>, vector<1x32x1xf32>
    %35 = vector.shape_cast %34 : vector<1x32x1xf32> to vector<32x1xf32>
    %c5_27 = arith.constant 5 : index
    %c0_28 = arith.constant 0 : index
    %c0_29 = arith.constant 0 : index
    %36 = vector.load %arg0[%c5_27, %c0_28, %c0_29] : memref<9x32x128xf32, #tpu.memory_space<vmem>>, vector<1x32x128xf32>
    %37 = vector.shape_cast %36 : vector<1x32x128xf32> to vector<32x128xf32>
    %38 = vector.broadcast %35 : vector<32x1xf32> to vector<32x128xf32>
    %39 = arith.mulf %38, %37 : vector<32x128xf32>
    %40 = arith.addf %33, %39 : vector<32x128xf32>
    %c6 = arith.constant 6 : index
    %c0_30 = arith.constant 0 : index
    %c0_31 = arith.constant 0 : index
    %41 = vector.load %arg1[%c6, %c0_30, %c0_31] : memref<13x32x1xf32, #tpu.memory_space<vmem>>, vector<1x32x1xf32>
    %42 = vector.shape_cast %41 : vector<1x32x1xf32> to vector<32x1xf32>
    %c6_32 = arith.constant 6 : index
    %c0_33 = arith.constant 0 : index
    %c0_34 = arith.constant 0 : index
    %43 = vector.load %arg0[%c6_32, %c0_33, %c0_34] : memref<9x32x128xf32, #tpu.memory_space<vmem>>, vector<1x32x128xf32>
    %44 = vector.shape_cast %43 : vector<1x32x128xf32> to vector<32x128xf32>
    %45 = vector.broadcast %42 : vector<32x1xf32> to vector<32x128xf32>
    %46 = arith.mulf %45, %44 : vector<32x128xf32>
    %47 = arith.addf %40, %46 : vector<32x128xf32>
    %c7 = arith.constant 7 : index
    %c0_35 = arith.constant 0 : index
    %c0_36 = arith.constant 0 : index
    %48 = vector.load %arg1[%c7, %c0_35, %c0_36] : memref<13x32x1xf32, #tpu.memory_space<vmem>>, vector<1x32x1xf32>
    %49 = vector.shape_cast %48 : vector<1x32x1xf32> to vector<32x1xf32>
    %c7_37 = arith.constant 7 : index
    %c0_38 = arith.constant 0 : index
    %c0_39 = arith.constant 0 : index
    %50 = vector.load %arg0[%c7_37, %c0_38, %c0_39] : memref<9x32x128xf32, #tpu.memory_space<vmem>>, vector<1x32x128xf32>
    %51 = vector.shape_cast %50 : vector<1x32x128xf32> to vector<32x128xf32>
    %52 = vector.broadcast %49 : vector<32x1xf32> to vector<32x128xf32>
    %53 = arith.mulf %52, %51 : vector<32x128xf32>
    %54 = arith.addf %47, %53 : vector<32x128xf32>
    %c8 = arith.constant 8 : index
    %c0_40 = arith.constant 0 : index
    %c0_41 = arith.constant 0 : index
    %55 = vector.load %arg1[%c8, %c0_40, %c0_41] : memref<13x32x1xf32, #tpu.memory_space<vmem>>, vector<1x32x1xf32>
    %56 = vector.shape_cast %55 : vector<1x32x1xf32> to vector<32x1xf32>
    %c8_42 = arith.constant 8 : index
    %c0_43 = arith.constant 0 : index
    %c0_44 = arith.constant 0 : index
    %57 = vector.load %arg0[%c8_42, %c0_43, %c0_44] : memref<9x32x128xf32, #tpu.memory_space<vmem>>, vector<1x32x128xf32>
    %58 = vector.shape_cast %57 : vector<1x32x128xf32> to vector<32x128xf32>
    %59 = vector.broadcast %56 : vector<32x1xf32> to vector<32x128xf32>
    %60 = arith.mulf %59, %58 : vector<32x128xf32>
    %61 = arith.addf %54, %60 : vector<32x128xf32>
    %c9 = arith.constant 9 : index
    %c0_45 = arith.constant 0 : index
    %c0_46 = arith.constant 0 : index
    %62 = vector.load %arg1[%c9, %c0_45, %c0_46] : memref<13x32x1xf32, #tpu.memory_space<vmem>>, vector<1x32x1xf32>
    %63 = vector.shape_cast %62 : vector<1x32x1xf32> to vector<32x1xf32>
    %64 = vector.broadcast %63 : vector<32x1xf32> to vector<32x128xf32>
    %65 = arith.addf %61, %64 : vector<32x128xf32>
    %c4_47 = arith.constant 4 : index
    %c0_48 = arith.constant 0 : index
    %c0_49 = arith.constant 0 : index
    %66 = vector.load %arg0[%c4_47, %c0_48, %c0_49] : memref<9x32x128xf32, #tpu.memory_space<vmem>>, vector<1x32x128xf32>
    %67 = vector.shape_cast %66 : vector<1x32x128xf32> to vector<32x128xf32>
    %c11 = arith.constant 11 : index
    %c0_50 = arith.constant 0 : index
    %c0_51 = arith.constant 0 : index
    %68 = vector.load %arg1[%c11, %c0_50, %c0_51] : memref<13x32x1xf32, #tpu.memory_space<vmem>>, vector<1x32x1xf32>
    %69 = vector.shape_cast %68 : vector<1x32x1xf32> to vector<32x1xf32>
    %70 = vector.broadcast %69 : vector<32x1xf32> to vector<32x128xf32>
    %71 = arith.mulf %67, %70 : vector<32x128xf32>
    %c10 = arith.constant 10 : index
    %c0_52 = arith.constant 0 : index
    %c0_53 = arith.constant 0 : index
    %72 = vector.load %arg1[%c10, %c0_52, %c0_53] : memref<13x32x1xf32, #tpu.memory_space<vmem>>, vector<1x32x1xf32>
    %73 = vector.shape_cast %72 : vector<1x32x1xf32> to vector<32x1xf32>
    %cst = arith.constant 5.000000e-01 : f32
    %74 = vector.broadcast %cst : f32 to vector<32x128xf32>
    %75 = arith.mulf %74, %65 : vector<32x128xf32>
    %cst_54 = arith.constant 0.707106769 : f32
    %76 = vector.broadcast %cst_54 : f32 to vector<32x128xf32>
    %77 = arith.mulf %65, %76 : vector<32x128xf32>
    %78 = math.erf %77 : vector<32x128xf32>
    %cst_55 = arith.constant 1.000000e+00 : f32
    %79 = vector.broadcast %cst_55 : f32 to vector<32x128xf32>
    %80 = arith.addf %79, %78 : vector<32x128xf32>
    %81 = arith.mulf %75, %80 : vector<32x128xf32>
    %82 = vector.broadcast %73 : vector<32x1xf32> to vector<32x128xf32>
    %83 = arith.mulf %82, %81 : vector<32x128xf32>
    %84 = arith.addf %71, %83 : vector<32x128xf32>
    %c12 = arith.constant 12 : index
    %c0_56 = arith.constant 0 : index
    %c0_57 = arith.constant 0 : index
    %85 = vector.load %arg1[%c12, %c0_56, %c0_57] : memref<13x32x1xf32, #tpu.memory_space<vmem>>, vector<1x32x1xf32>
    %86 = vector.shape_cast %85 : vector<1x32x1xf32> to vector<32x1xf32>
    %87 = vector.broadcast %86 : vector<32x1xf32> to vector<32x128xf32>
    %88 = arith.addf %84, %87 : vector<32x128xf32>
    %89 = vector.extract_strided_slice %88 {offsets = [0, 0], sizes = [32, 64], strides = [1, 1]} : vector<32x128xf32> to vector<32x64xf32>
    %c0_58 = arith.constant 0 : index
    %c0_59 = arith.constant 0 : index
    %c0_60 = arith.constant 0 : index
    %90 = vector.load %arg2[%c0_58, %c0_59, %c0_60] : memref<2x32x64xf32, #tpu.memory_space<vmem>>, vector<1x32x64xf32>
    %91 = vector.shape_cast %90 : vector<1x32x64xf32> to vector<32x64xf32>
    %92 = vector.shape_cast %89 : vector<32x64xf32> to vector<1x32x64xf32>
    tpu.vector_store %arg2[%c0_58, %c0_59, %c0_60], %92 {strides = array<i32>} : memref<2x32x64xf32, #tpu.memory_space<vmem>>, vector<1x32x64xf32>,
    %93 = vector.extract_strided_slice %88 {offsets = [0, 64], sizes = [32, 64], strides = [1, 1]} : vector<32x128xf32> to vector<32x64xf32>
    %c1_61 = arith.constant 1 : index
    %c0_62 = arith.constant 0 : index
    %c0_63 = arith.constant 0 : index
    %94 = vector.load %arg2[%c1_61, %c0_62, %c0_63] : memref<2x32x64xf32, #tpu.memory_space<vmem>>, vector<1x32x64xf32>
    %95 = vector.shape_cast %94 : vector<1x32x64xf32> to vector<32x64xf32>
    %96 = vector.shape_cast %93 : vector<32x64xf32> to vector<1x32x64xf32>
    tpu.vector_store %arg2[%c1_61, %c0_62, %c0_63], %96 {strides = array<i32>} : memref<2x32x64xf32, #tpu.memory_space<vmem>>, vector<1x32x64xf32>,
    return
  }
}

</mosaic_0001>

<bundles_post_ra>
// kernel: conv_encoder_layer.1
= control target key start
LH: loop header
LB: loop body
LE: loop exit
PB: predicated region body
PF: predicated region fallthrough
CT: control target
= control target key end

     0   :  { %v647_v2 = vmov 0   ;;  %s982_s0 = inlined_call_operand.vmem [shape: f32[9,32,128], index: 0, kind: input, shape index: {}]   ;;  %s983_s1 = inlined_call_operand.vmem [shape: f32[13,32,1], index: 1, kind: input, shape index: {}]   ;;  %s984_s2 = inlined_call_operand.hbm [shape: f32[2,32,64], index: 2, kind: output, shape index: {}]  }
   0x1   :  { %v14_v0 = vld [vmem:[%s983_s1 + $0x10] sm:$0xff]  ;;  %v12_v1 = vld [vmem:[%s983_s1] sm:$0xff]  ;;  %616 = vset.pattern.permute.xlu1 %v647_v2  ;;  %615 = vset.pattern.permute.xlu0 %v647_v2  ;;  %v15_v3 = vld [vmem:[%s983_s1 + $0x18] sm:$0xff] }
   0x2   :  { %32 = vperm.xlu1 %616, %v14_v0   ;;  %22 = vperm.xlu0 %615, %v12_v1   ;;  %v13_v4 = vld [vmem:[%s983_s1 + $0x8] sm:$0xff]  ;;  %v530_v6 = vld [vmem:[%s983_s1 + $0x20] sm:$0xff]  ;;  %v533_v7 = vld [vmem:[%s983_s1 + $0x38] sm:$0xff] }
   0x3   :  { %v531_v5 = vld [vmem:[%s983_s1 + $0x28] sm:$0xff]  ;;  %v532_v8 = vld [vmem:[%s983_s1 + $0x30] sm:$0xff]  ;;  %v538_v10 = vld [vmem:[%s983_s1 + $0x40] sm:$0xff] }
   0x4   :  { %v539_v9 = vld [vmem:[%s983_s1 + $0x48] sm:$0xff]  ;;  %v541_v11 = vld [vmem:[%s983_s1 + $0x58] sm:$0xff]  ;;  %v540_v12 = vld [vmem:[%s983_s1 + $0x50] sm:$0xff] }
   0x6   :  { %37 = vperm.xlu1 %616, %v15_v3   ;;  %27 = vperm.xlu0 %615, %v13_v4  }
   0xa   :  { %61 = vperm.xlu1 %616, %v531_v5   ;;  %56 = vperm.xlu0 %615, %v530_v6  }
   0xe   :  { %71 = vperm.xlu1 %616, %v533_v7   ;;  %66 = vperm.xlu0 %615, %v532_v8  }
  0x12   :  { %99 = vperm.xlu1 %616, %v539_v9   ;;  %94 = vperm.xlu0 %615, %v538_v10  }
  0x16   :  { %109 = vperm.xlu1 %616, %v541_v11   ;;  %104 = vperm.xlu0 %615, %v540_v12  }
  0x17   :  { %7 = vsyncpa [#allocation3], 0  ;;  %v547_v13 = vld [vmem:[%s983_s1 + $0x68] sm:$0xff]  ;;  %v546_v14 = vld [vmem:[%s983_s1 + $0x60] sm:$0xff]  ;;  %vm488_vm0 = vcmask 523264   ;;  %s649_s14 = smov [#allocation2]  }
  0x18   :  { %v549_v15 = vld [vmem:[%s983_s1 + $0x78] sm:$0xff]  ;;  %v548_v16 = vld [vmem:[%s983_s1 + $0x70] sm:$0xff]  ;;  %v555_v17 = vld [vmem:[%s983_s1 + $0x88] sm:$0xff]  ;;  %s519_s15 = sshll.u32 %s649_s14, 4  ;;  %s520_s15 = int_to_ptr.vmem [resolvable:$true] %s519_s15 }
  0x19   :  { %v554_v18 = vld [vmem:[%s983_s1 + $0x80] sm:$0xff]  ;;  %v557_v19 = vld [vmem:[%s983_s1 + $0x98] sm:$0xff]  ;;  %v556_v20 = vld [vmem:[%s983_s1 + $0x90] sm:$0xff]  ;;  %s625_s16 = scalar_lea.vmem %s520_s15, 1024  ;;  %p630_p1 = scmp.lt.s32.totalorder %s520_s15, %s520_s15 }
  0x1a   :  { %137 = vperm.xlu1 %616, %v547_v13   ;;  %132 = vperm.xlu0 %615, %v546_v14   ;;  %v563_v21 = vld [vmem:[%s983_s1 + $0xa8] sm:$0xff]  ;;  %v562_v22 = vld [vmem:[%s983_s1 + $0xa0] sm:$0xff]  ;;  %v565_v23 = vld [vmem:[%s983_s1 + $0xb8] sm:$0xff]  ;;  %p626_p0 = scmp.ne.s32.totalorder %s520_s15, %s625_s16  ;;  %p631_p2 = scmp.lt.s32.totalorder %s625_s16, %s625_s16 }
  0x1b   :  { %v564_v24 = vld [vmem:[%s983_s1 + $0xb0] sm:$0xff]  ;;  %v571_v25 = vld [vmem:[%s983_s1 + $0xc8] sm:$0xff]  ;;  %v570_v26 = vld [vmem:[%s983_s1 + $0xc0] sm:$0xff] }
  0x1c   :  { %v573_v27 = vld [vmem:[%s983_s1 + $0xd8] sm:$0xff]  ;;  %v572_v28 = vld [vmem:[%s983_s1 + $0xd0] sm:$0xff]  ;;  %v579_v29 = vld [vmem:[%s983_s1 + $0xe8] sm:$0xff]  ;;  %p632_p3 = por %p631_p2, %p630_p1 }
  0x1d   :  { %v578_v30 = vld [vmem:[%s983_s1 + $0xe0] sm:$0xff]  ;;  %v581_v31 = vld [vmem:[%s983_s1 + $0xf8] sm:$0xff]  ;;  %v580_v32 = vld [vmem:[%s983_s1 + $0xf0] sm:$0xff] }
  0x1e   :  { %147 = vperm.xlu1 %616, %v549_v15   ;;  %142 = vperm.xlu0 %615, %v548_v16   ;;  %v587_v33 = vld [vmem:[%s983_s1 + $0x108] sm:$0xff]  ;;  %v586_v34 = vld [vmem:[%s983_s1 + $0x100] sm:$0xff]  ;;  %v589_v35 = vld [vmem:[%s983_s1 + $0x118] sm:$0xff]  ;;  %p633_p4 = pnand %p632_p3, %p626_p0 }
  0x1f   :  { %v588_v36 = vld [vmem:[%s983_s1 + $0x110] sm:$0xff]  ;;  %v595_v37 = vld [vmem:[%s983_s1 + $0x128] sm:$0xff]  ;;  %v594_v38 = vld [vmem:[%s983_s1 + $0x120] sm:$0xff] }
  0x20   :  { %v597_v39 = vld [vmem:[%s983_s1 + $0x138] sm:$0xff]  ;;  %v596_v40 = vld [vmem:[%s983_s1 + $0x130] sm:$0xff]  ;;  %v599_v41 = vld [vmem:[%s983_s1 + $0x168] sm:$0xff] }
  0x21   :  { %v598_v42 = vld [vmem:[%s983_s1 + $0x160] sm:$0xff]  ;;  %v601_v43 = vld [vmem:[%s983_s1 + $0x178] sm:$0xff]  ;;  %v600_v44 = vld [vmem:[%s983_s1 + $0x170] sm:$0xff] }
  0x22   :  { %175 = vperm.xlu1 %616, %v555_v17   ;;  %170 = vperm.xlu0 %615, %v554_v18   ;;  %v603_v45 = vld [vmem:[%s983_s1 + $0x148] sm:$0xff]  ;;  %v602_v46 = vld [vmem:[%s983_s1 + $0x140] sm:$0xff]  ;;  %v605_v47 = vld [vmem:[%s983_s1 + $0x158] sm:$0xff] }
  0x23   :  { %v604_v48 = vld [vmem:[%s983_s1 + $0x150] sm:$0xff]  ;;  %v607_v49 = vld [vmem:[%s983_s1 + $0x188] sm:$0xff]  ;;  %v606_v50 = vld [vmem:[%s983_s1 + $0x180] sm:$0xff] }
  0x24   :  { %v609_v51 = vld [vmem:[%s983_s1 + $0x198] sm:$0xff]  ;;  %v608_v52 = vld [vmem:[%s983_s1 + $0x190] sm:$0xff]  ;;  %v535_v15 = vld [vmem:[%s982_s0 + $0x28] sm:$0xff] }
  0x25   :  { %v534_v16 = vld [vmem:[%s982_s0 + $0x20] sm:$0xff]  ;;  %v17_v18 = vld [vmem:[%s982_s0 + $0x8] sm:$0xff] }
  0x26   :  { %185 = vperm.xlu1 %616, %v557_v19   ;;  %180 = vperm.xlu0 %615, %v556_v20   ;;  %v16_v17 = vld [vmem:[%s982_s0] sm:$0xff]  ;;  %v543_v19 = vld [vmem:[%s982_s0 + $0x48] sm:$0xff] }
  0x27   :  { %v542_v20 = vld [vmem:[%s982_s0 + $0x40] sm:$0xff] }
  0x2a   :  { %213 = vperm.xlu1 %616, %v563_v21   ;;  %208 = vperm.xlu0 %615, %v562_v22  }
  0x2e   :  { %223 = vperm.xlu1 %616, %v565_v23   ;;  %218 = vperm.xlu0 %615, %v564_v24  }
  0x32   :  { %251 = vperm.xlu1 %616, %v571_v25   ;;  %246 = vperm.xlu0 %615, %v570_v26   ;;  %v537_v25 = vld [vmem:[%s982_s0 + $0x38] sm:$0xff]  ;;  %v536_v26 = vld [vmem:[%s982_s0 + $0x30] sm:$0xff] }
  0x36   :  { %261 = vperm.xlu1 %616, %v573_v27   ;;  %256 = vperm.xlu0 %615, %v572_v28   ;;  %v18_v27 = vld [vmem:[%s982_s0 + $0x10] sm:$0xff]  ;;  %v551_v28 = vld [vmem:[%s982_s0 + $0x68] sm:$0xff] }
  0x3a   :  { %289 = vperm.xlu1 %616, %v579_v29   ;;  %284 = vperm.xlu0 %615, %v578_v30   ;;  %v550_v29 = vld [vmem:[%s982_s0 + $0x60] sm:$0xff] }
  0x3e   :  { %299 = vperm.xlu1 %616, %v581_v31   ;;  %294 = vperm.xlu0 %615, %v580_v32   ;;  %v19_v31 = vld [vmem:[%s982_s0 + $0x18] sm:$0xff] }
  0x42   :  { %327 = vperm.xlu1 %616, %v587_v33   ;;  %322 = vperm.xlu0 %615, %v586_v34  }
  0x46   :  { %337 = vperm.xlu1 %616, %v589_v35   ;;  %332 = vperm.xlu0 %615, %v588_v36   ;;  %v545_v35 = vld [vmem:[%s982_s0 + $0x58] sm:$0xff]  ;;  %v544_v36 = vld [vmem:[%s982_s0 + $0x50] sm:$0xff] }
  0x4a   :  { %360 = vperm.xlu1 %616, %v595_v37   ;;  %355 = vperm.xlu0 %615, %v594_v38  }
  0x4e   :  { %370 = vperm.xlu1 %616, %v597_v39   ;;  %365 = vperm.xlu0 %615, %v596_v40   ;;  %v884_v39 = vld [vmem:[%s982_s0 + $0x88] sm:$0xff]  ;;  %v889_v40 = vld [vmem:[%s982_s0 + $0x80] sm:$0xff] }
  0x52   :  { %389 = vperm.xlu1 %616, %v599_v41   ;;  %384 = vperm.xlu0 %615, %v598_v42  }
  0x56   :  { %399 = vperm.xlu1 %616, %v601_v43   ;;  %394 = vperm.xlu0 %615, %v600_v44  }
  0x5a   :  { %438 = vperm.xlu1 %616, %v603_v45   ;;  %433 = vperm.xlu0 %615, %v602_v46  }
  0x5e   :  { %448 = vperm.xlu1 %616, %v605_v47   ;;  %443 = vperm.xlu0 %615, %v604_v48   ;;  %v553_v47 = vld [vmem:[%s982_s0 + $0x78] sm:$0xff]  ;;  %v552_v48 = vld [vmem:[%s982_s0 + $0x70] sm:$0xff] }
  0x62   :  { %471 = vperm.xlu1 %616, %v607_v49   ;;  %466 = vperm.xlu0 %615, %v606_v50  }
  0x66   :  { %481 = vperm.xlu1 %616, %v609_v51   ;;  %476 = vperm.xlu0 %615, %v608_v52  }
  0x7d   :  { %v33_v53 = vpop.permute.xlu1 %32  ;;  %v23_v54 = vpop.permute.xlu0 %22 }
  0x7e   :  { %v40_v30 = vmul.f32 %v23_v54, %v16_v17  ;;  %v42_v49 = vmul.f32 %v33_v53, %v18_v27  ;;  %v567_v54 = vld [vmem:[%s982_s0 + $0xa8] sm:$0xff]  ;;  %v908_v53 = vld [vmem:[%s982_s0 + $0x98] sm:$0xff] }
  0x81   :  { %v38_v55 = vpop.permute.xlu1 %37  ;;  %v28_v56 = vpop.permute.xlu0 %27 }
  0x82   :  { %v41_v32 = vmul.f32 %v28_v56, %v17_v18  ;;  %v43_v50 = vmul.f32 %v38_v55, %v19_v31  ;;  %v566_v56 = vld [vmem:[%s982_s0 + $0xa0] sm:$0xff]  ;;  %v913_v55 = vld [vmem:[%s982_s0 + $0x90] sm:$0xff] }
  0x85   :  { %v62_v57 = vpop.permute.xlu1 %61  ;;  %v57_v58 = vpop.permute.xlu0 %56 }
  0x86   :  { %v75_v23 = vmul.f32 %v535_v15, %v62_v57  ;;  %v74_v24 = vmul.f32 %v534_v16, %v57_v58 }
  0x88   :  { %v79_v43 = vadd.f32 %v75_v23, %v41_v32  ;;  %v78_v44 = vadd.f32 %v74_v24, %v40_v30 }
  0x89   :  { %v72_v59 = vpop.permute.xlu1 %71  ;;  %v67_v60 = vpop.permute.xlu0 %66 }
  0x8a   :  { %v77_v37 = vmul.f32 %v537_v25, %v72_v59  ;;  %v76_v38 = vmul.f32 %v536_v26, %v67_v60 }
  0x8d   :  { %v100_v61 = vpop.permute.xlu1 %99  ;;  %v95_v62 = vpop.permute.xlu0 %94 }
  0x8e   :  { %v113_v33 = vmul.f32 %v543_v19, %v100_v61  ;;  %v112_v34 = vmul.f32 %v542_v20, %v95_v62  ;;  %v81_v61 = vadd.f32 %v77_v37, %v43_v50  ;;  %v80_v62 = vadd.f32 %v76_v38, %v42_v49  ;;  %v569_v19 = vld [vmem:[%s982_s0 + $0xb8] sm:$0xff] }
  0x90   :  { %v117_v57 = vadd.f32 %v113_v33, %v79_v43  ;;  %v116_v58 = vadd.f32 %v112_v34, %v78_v44 }
  0x91   :  { %v110_v63 = vpop.permute.xlu1 %109  ;;  %v105_v0 = vpop.permute.xlu0 %104 }
  0x92   :  { %v115_v51 = vmul.f32 %v545_v35, %v110_v63  ;;  %v114_v52 = vmul.f32 %v544_v36, %v105_v0 }
  0x94   :  { %v118_v20 = vadd.f32 %v114_v52, %v80_v62 }
  0x95   :  { %v138_v1 = vpop.permute.xlu1 %137  ;;  %v133_v2 = vpop.permute.xlu0 %132 }
  0x96   :  { %v151_v45 = vmul.f32 %v551_v28, %v138_v1  ;;  %v150_v46 = vmul.f32 %v550_v29, %v133_v2  ;;  %v575_v1 = vld [vmem:[%s982_s0 + $0xc8] sm:$0xff]  ;;  %v574_v2 = vld [vmem:[%s982_s0 + $0xc0] sm:$0xff] }
  0x98   :  { %v155_v15 = vadd.f32 %v151_v45, %v117_v57  ;;  %v154_v16 = vadd.f32 %v150_v46, %v116_v58  ;;  %v585_v45 = vld [vmem:[%s982_s0 + $0xf8] sm:$0xff]  ;;  %v584_v46 = vld [vmem:[%s982_s0 + $0xf0] sm:$0xff] }
  0x99   :  { %v148_v3 = vpop.permute.xlu1 %147  ;;  %v143_v4 = vpop.permute.xlu0 %142 }
  0x9a   :  { %v153_v63 = vmul.f32 %v553_v47, %v148_v3  ;;  %v152_v0 = vmul.f32 %v552_v48, %v143_v4  ;;  %v568_v3 = vld [vmem:[%s982_s0 + $0xb0] sm:$0xff]  ;;  %v119_v4 = vadd.f32 %v115_v51, %v81_v61 }
  0x9c   :  { %v157_v29 = vadd.f32 %v153_v63, %v119_v4  ;;  %v156_v30 = vadd.f32 %v152_v0, %v118_v20 }
  0x9d   :  { %v176_v5 = vpop.permute.xlu1 %175  ;;  %v171_v6 = vpop.permute.xlu0 %170 }
  0x9e   :  { %v189_v59 = vmul.f32 %v884_v39, %v176_v5  ;;  %v188_v60 = vmul.f32 %v889_v40, %v171_v6 }
  0xa0   :  { %v193_v25 = vadd.f32 %v189_v59, %v155_v15  ;;  %v192_v26 = vadd.f32 %v188_v60, %v154_v16 }
  0xa1   :  { %v823_v7 = vpop.permute.xlu1 %185  ;;  %v825_v8 = vpop.permute.xlu0 %180 }
  0xa2   :  { %v191_v23 = vmul.f32 %v908_v53, %v823_v7  ;;  %v190_v24 = vmul.f32 %v913_v55, %v825_v8  ;;  %v577_v7 = vld [vmem:[%s982_s0 + $0xd8] sm:$0xff]  ;;  %v576_v8 = vld [vmem:[%s982_s0 + $0xd0] sm:$0xff] }
  0xa4   :  { %v195_v43 = vadd.f32 %v191_v23, %v157_v29  ;;  %v194_v44 = vadd.f32 %v190_v24, %v156_v30 }
  0xa5   :  { %v214_v9 = vpop.permute.xlu1 %213  ;;  %v209_v10 = vpop.permute.xlu0 %208 }
  0xa6   :  { %v227_v17 = vmul.f32 %v567_v54, %v214_v9  ;;  %v226_v18 = vmul.f32 %v566_v56, %v209_v10  ;;  %v583_v9 = vld [vmem:[%s982_s0 + $0xe8] sm:$0xff]  ;;  %v582_v10 = vld [vmem:[%s982_s0 + $0xe0] sm:$0xff] }
  0xa8   :  { %v231_v35 = vadd.f32 %v227_v17, %v193_v25  ;;  %v230_v36 = vadd.f32 %v226_v18, %v192_v26 }
  0xa9   :  { %v827_v11 = vpop.permute.xlu1 %223  ;;  %v829_v12 = vpop.permute.xlu0 %218 }
  0xaa   :  { %v229_v31 = vmul.f32 %v569_v19, %v827_v11  ;;  %v228_v32 = vmul.f32 %v568_v3, %v829_v12 }
  0xad   :  { %v831_v13 = vpop.permute.xlu1 %251  ;;  %v833_v14 = vpop.permute.xlu0 %246 }
  0xae   :  { %v265_v27 = vmul.f32 %v575_v1, %v831_v13  ;;  %v264_v28 = vmul.f32 %v574_v2, %v833_v14  ;;  %v591_v13 = vld [vmem:[%s982_s0 + $0x108] sm:$0xff]  ;;  %v590_v14 = vld [vmem:[%s982_s0 + $0x100] sm:$0xff] }
  0xb0   :  { %v269_v47 = vadd.f32 %v265_v27, %v231_v35  ;;  %v268_v48 = vadd.f32 %v264_v28, %v230_v36 }
  0xb1   :  { %v853_v21 = vpop.permute.xlu1 %261  ;;  %v855_v22 = vpop.permute.xlu0 %256 }
  0xb2   :  { %v267_v11 = vmul.f32 %v577_v7, %v853_v21  ;;  %v266_v12 = vmul.f32 %v576_v8, %v855_v22  ;;  %v593_v21 = vld [vmem:[%s982_s0 + $0x118] sm:$0xff]  ;;  %v592_v22 = vld [vmem:[%s982_s0 + $0x110] sm:$0xff]  ;;  %s648_s0 = smov 64  }
  0xb5   :  { %v290_v41 = vpop.permute.xlu1 %289  ;;  %v285_v42 = vpop.permute.xlu0 %284 }
  0xb6   :  { %v303_v37 = vmul.f32 %v583_v9, %v290_v41  ;;  %v302_v38 = vmul.f32 %v582_v10, %v285_v42  ;;  %v233_v41 = vadd.f32 %v229_v31, %v195_v43  ;;  %v232_v42 = vadd.f32 %v228_v32, %v194_v44 }
  0xb8   :  { %v307_v54 = vadd.f32 %v303_v37, %v269_v47  ;;  %v306_v56 = vadd.f32 %v302_v38, %v268_v48  ;;  %v271_v59 = vadd.f32 %v267_v11, %v233_v41  ;;  %v270_v60 = vadd.f32 %v266_v12, %v232_v42 }
  0xb9   :  { %v300_v5 = vpop.permute.xlu1 %299  ;;  %v295_v6 = vpop.permute.xlu0 %294 }
  0xba   :  { %v305_v57 = vmul.f32 %v585_v45, %v300_v5  ;;  %v304_v58 = vmul.f32 %v584_v46, %v295_v6 }
  0xbc   :  { %v309_v15 = vadd.f32 %v305_v57, %v271_v59  ;;  %v308_v16 = vadd.f32 %v304_v58, %v270_v60 }
  0xbd   :  { %v328_v33 = vpop.permute.xlu1 %327  ;;  %v323_v34 = vpop.permute.xlu0 %322 }
  0xbe   :  { %v341_v49 = vmul.f32 %v591_v13, %v328_v33  ;;  %v340_v50 = vmul.f32 %v590_v14, %v323_v34 }
  0xc0   :  { %v345_v63 = vadd.f32 %v341_v49, %v307_v54  ;;  %v344_v0 = vadd.f32 %v340_v50, %v306_v56 }
  0xc1   :  { %v338_v51 = vpop.permute.xlu1 %337  ;;  %v333_v52 = vpop.permute.xlu0 %332 }
  0xc2   :  { %v343_v61 = vmul.f32 %v593_v21, %v338_v51  ;;  %v342_v62 = vmul.f32 %v592_v22, %v333_v52 }
  0xc4   :  { %v347_v4 = vadd.f32 %v343_v61, %v309_v15  ;;  %v346_v20 = vadd.f32 %v342_v62, %v308_v16 }
  0xc5   :  { %v361_v1 = vpop.permute.xlu1 %360  ;;  %v356_v2 = vpop.permute.xlu0 %355 }
  0xc6   :  { %v374_v17 = vadd.f32 %v361_v1, %v345_v63  ;;  %v373_v18 = vadd.f32 %v356_v2, %v344_v0 }
  0xc8   :  { %v416_v19 = vmul.f32 0.70710677, %v374_v17  ;;  %v415_v3 = vmul.f32 0.70710677, %v373_v18  ;;  %v412_v31 = vmul.f32 0.5, %v374_v17  ;;  %v411_v13 = vmul.f32 0.5, %v373_v18 }
  0xc9   :  { %v371_v23 = vpop.permute.xlu1 %370  ;;  %v366_v24 = vpop.permute.xlu0 %365 }
  0xca   :  { %617 = verf.f32 %v416_v19  ;;  %v376_v5 = vadd.f32 %v371_v23, %v347_v4  ;;  %v375_v6 = vadd.f32 %v366_v24, %v346_v20 }
  0xcb   :  { %619 = verf.f32 %v415_v3 }
  0xcc   :  { %v418_v9 = vmul.f32 0.70710677, %v376_v5  ;;  %v417_v10 = vmul.f32 0.70710677, %v375_v6  ;;  %v414_v43 = vmul.f32 0.5, %v376_v5  ;;  %v413_v45 = vmul.f32 0.5, %v375_v6 }
  0xcd   :  { %v390_v25 = vpop.permute.xlu1 %389  ;;  %v385_v26 = vpop.permute.xlu0 %384 }
  0xce   :  { %621 = verf.f32 %v418_v9  ;;  %v403_v44 = vmul.f32 %v884_v39, %v390_v25  ;;  %v402_v46 = vmul.f32 %v889_v40, %v385_v26 }
  0xcf   :  { %623 = verf.f32 %v417_v10 }
  0xd1   :  { %v400_v27 = vpop.permute.xlu1 %399  ;;  %v395_v28 = vpop.permute.xlu0 %394 }
  0xd2   :  { %v405_v22 = vmul.f32 %v908_v53, %v400_v27  ;;  %v404_v39 = vmul.f32 %v913_v55, %v395_v28 }
  0xd5   :  { %v439_v7 = vpop.permute.xlu1 %438  ;;  %v434_v8 = vpop.permute.xlu0 %433 }
  0xd7   :  { %v618_v29 = vpop.eup %617 }
  0xd8   :  { %v620_v30 = vpop.eup %619  ;;  %v424_v32 = vadd.f32 1.0, %v618_v29 }
  0xd9   :  { %v423_v33 = vadd.f32 1.0, %v620_v30  ;;  %v449_v14 = vpop.permute.xlu1 %448  ;;  %v444_v34 = vpop.permute.xlu0 %443 }
  0xda   :  { %v428_v35 = vmul.f32 %v424_v32, %v412_v31 }
  0xdb   :  { %v622_v36 = vpop.eup %621  ;;  %v427_v37 = vmul.f32 %v423_v33, %v411_v13 }
  0xdc   :  { %v624_v38 = vpop.eup %623  ;;  %v452_v11 = vmul.f32 %v439_v7, %v428_v35  ;;  %v426_v12 = vadd.f32 1.0, %v622_v36 }
  0xdd   :  { %v451_v47 = vmul.f32 %v434_v8, %v427_v37  ;;  %v425_v48 = vadd.f32 1.0, %v624_v38  ;;  %v472_v49 = vpop.permute.xlu1 %471  ;;  %v467_v42 = vpop.permute.xlu0 %466 }
  0xde   :  { %v430_v50 = vmul.f32 %v426_v12, %v414_v43  ;;  %v456_v41 = vadd.f32 %v452_v11, %v403_v44 }
  0xdf   :  { %v429_v21 = vmul.f32 %v425_v48, %v413_v45  ;;  %v455_v51 = vadd.f32 %v451_v47, %v402_v46 }
  0xe0   :  { %v454_v52 = vmul.f32 %v449_v14, %v430_v50  ;;  %v485_v54 = vadd.f32 %v472_v49, %v456_v41 }
  0xe1   :  { %v453_v56 = vmul.f32 %v444_v34, %v429_v21  ;;  %v484_v57 = vadd.f32 %v467_v42, %v455_v51  ;;  %v482_v58 = vpop.permute.xlu1 %481  ;;  %v477_v61 = vpop.permute.xlu0 %476 }
  0xe2   :  { %490 = vst.msk [vmem:[#allocation2 + $0x8] sm:$0xff] %vm488_vm0, %v485_v54  ;;  %v458_v40 = vadd.f32 %v454_v52, %v405_v22  ;;  %499 = vrot.lane.b32.xlu1 %v485_v54, %s648_s0 }
  0xe3   :  { %489 = vst.msk [vmem:[#allocation2] sm:$0xff] %vm488_vm0, %v484_v57  ;;  %v457_v59 = vadd.f32 %v453_v56, %v404_v39  ;;  %497 = vrot.lane.b32.xlu0 %v484_v57, %s648_s0 }
  0xe4   :  { %v487_v60 = vadd.f32 %v482_v58, %v458_v40 }
  0xe5   :  { %v486_v62 = vadd.f32 %v477_v61, %v457_v59 }
  0xe6   :  { %492 = vst.msk [vmem:[#allocation2 + $0x18] sm:$0xff] %vm488_vm0, %v487_v60  ;;  %503 = vrot.lane.b32.xlu1 %v487_v60, %s648_s0 }
  0xe7   :  { %491 = vst.msk [vmem:[#allocation2 + $0x10] sm:$0xff] %vm488_vm0, %v486_v62  ;;  %501 = vrot.lane.b32.xlu0 %v486_v62, %s648_s0 }
 0x154   :  { %v500_v53 = vpop.permute.xlu1 %499 }
 0x155   :  { %511 = vst.msk [vmem:[#allocation2 + $0x28] sm:$0xff] %vm488_vm0, %v500_v53  ;;  %v498_v55 = vpop.permute.xlu0 %497 }
 0x156   :  { %510 = vst.msk [vmem:[#allocation2 + $0x20] sm:$0xff] %vm488_vm0, %v498_v55 }
 0x158   :  { %v504_v63 = vpop.permute.xlu1 %503 }
 0x159   :  { %513 = vst.msk [vmem:[#allocation2 + $0x38] sm:$0xff] %vm488_vm0, %v504_v63  ;;  %v502_v0 = vpop.permute.xlu0 %501 }
 0x15a   :  { %512 = vst.msk [vmem:[#allocation2 + $0x30] sm:$0xff] %vm488_vm0, %v502_v0 }
 0x15b   :  { %636 = shalt.err (!%p633_p4)
}
 0x15c   :  { %s650_s17 = smov 128   ;;  %s651_s18 = smov 8  }
 0x15d   :  { %525 = dma.vmem_to_hbm [thread:$0]  %s520_s15, 1024, %s984_s2, [#allocation3], %s650_s17, %s650_s17, %s651_s18  }
 0x15e   :  { %645 = dma.done.wait [#allocation3], 1024  }
 0x15f   :  { %646 = vsyncadd [#allocation3], 4294966272 }
 0x160   :  { %529 = vsyncpa [#allocation3], 1 }

</bundles_post_ra>
